<compile_context>
chip_gen: v6e
topology: v6e:2x2x1
jax: 0.10.0
libtpu: 0.0.40
codegen_flags: <defaults>
</compile_context>

<pallas_src>
import functools

import jax
import jax.numpy as jnp
from jax.experimental import pallas as pl
from jax.experimental.pallas import tpu as pltpu


def _conv_attn_kernel(text_ref, wcat_ref, bcat_ref, img_ref, o_ref,
                      *, nf, batch, channels, mxu_dtype):
    """One grid step = one image-batch element b.

    text_ref : (B, Q)            question features (resident across steps)
    wcat_ref : (Q, nf*C)         all nf linear weights, concatenated on lanes
    bcat_ref : (1, nf*C)         all nf linear biases, concatenated on lanes
    img_ref  : (1, C, W*H)       image slab for batch b, pixels on lanes
    o_ref    : (nf, 1, B, W*H)   attention maps for batch b
    """
    # --- Fused linear stage: ONE MXU matmul for all nf layers. -------------
    text = text_ref[...]                                           # (B, Q)
    s2 = jnp.dot(text, wcat_ref[...],
                 preferred_element_type=jnp.float32) + bcat_ref[...]  # (B, nf*C)

    # Rearrange (B, nf*C) -> (nf*B, C): row (i, b') holds s_i[b'].
    # nf*B*C*4 bytes of lane->sublane shuffling -> essentially free.
    s_stack = jnp.concatenate(
        [s2[:, i * channels:(i + 1) * channels] for i in range(nf)], axis=0)

    # --- Fused "1x1 conv": ONE matmul for all layers and all sentences. ----
    img_b = img_ref[0]                                             # (C, W*H)
    res = jnp.dot(s_stack.astype(mxu_dtype), img_b.astype(mxu_dtype),
                  preferred_element_type=jnp.float32)              # (nf*B, W*H)

    # Store per layer i; each (B, W*H) slab targets its own (8,128) output
    # tile (the 4-D output layout puts every i in a distinct tile, so there is
    # no serialization on a shared sublane tile).
    for i in range(nf):
        o_ref[i, 0, :, :] = res[i * batch:(i + 1) * batch, :].astype(o_ref.dtype)


def convolved_attention(img_feat, text_feat, weights, biases, *, use_bf16_mxu=False):
    """
    img_feat : (B, C, W, H)  float32  (NCHW, as in PyTorch)
    text_feat: (B, Q)        float32
    weights  : (nf, Q, C)    stacked Linear weights (x @ W convention)
    biases   : (nf, C)       stacked Linear biases
    returns  : (nf*B, B, W, H) float32, matching the PyTorch output layout
    """
    B, C, W, H = img_feat.shape
    nf, Q, Cw = weights.shape
    assert Cw == C, "fc_size must equal image channel count (F.conv2d constraint)"
    WH = W * H

    # Free, contiguous view of the image (no transpose / extra HBM copy).
    img3 = img_feat.reshape(B, C, WH)
    # Tiny param prep (nf*Q*C floats); a real module would store params this way.
    w_cat = jnp.transpose(weights, (1, 0, 2)).reshape(Q, nf * C)   # (Q, nf*C)
    b_cat = biases.reshape(1, nf * C)                              # (1, nf*C)

    flops = 2 * B * B * Q * nf * C + 2 * nf * B * B * C * WH
    bytes_accessed = 4 * (B * Q + Q * nf * C + nf * C + B * C * WH + nf * B * B * WH)

    out = pl.pallas_call(
        functools.partial(
            _conv_attn_kernel, nf=nf, batch=B, channels=C,
            mxu_dtype=jnp.bfloat16 if use_bf16_mxu else jnp.float32),
        out_shape=jax.ShapeDtypeStruct((nf, B, B, WH), img_feat.dtype),
        grid=(B,),
        in_specs=[
            pl.BlockSpec((B, Q), lambda b: (0, 0)),            # text (resident)
            pl.BlockSpec((Q, nf * C), lambda b: (0, 0)),       # fused weights
            pl.BlockSpec((1, nf * C), lambda b: (0, 0)),       # fused biases
            pl.BlockSpec((1, C, WH), lambda b: (b, 0, 0)),     # image slab for b
        ],
        out_specs=pl.BlockSpec((nf, 1, B, WH), lambda b: (0, b, 0, 0)),
        compiler_params=pltpu.CompilerParams(
            dimension_semantics=("parallel",)),                # 2 TCs on v7x
        cost_estimate=pl.CostEstimate(
            flops=flops, transcendentals=0, bytes_accessed=bytes_accessed),
    )(text_feat, w_cat, b_cat, img3)

    # out[i, b, b', w*H + h] -> (nf*B, B, W, H); contiguous leading dims -> free.
    return out.reshape(nf * B, B, W, H)


def _reference(img_feat, text_feat, weights, biases):
    """Plain-JAX reference matching the PyTorch forward exactly."""
    nf = weights.shape[0]
    outs = []
    for i in range(nf):
        s = text_feat @ weights[i] + biases[i]                 # (B, C)
        att = jnp.einsum("bcwh,nc->bnwh", img_feat, s)         # (B, B, W, H)
        outs.append(att)
    return jnp.concatenate(outs, axis=0)                       # (nf*B, B, W, H)


if __name__ == "__main__":
    # Module config (synthetic, deterministic init):
    num_sent_fc = 3
    img_feat_size = 8      # C  (== fc_size, required by F.conv2d semantics)
    ques_feat_size = 32    # Q
    fc_size = 8

    B, C, W, H = 2, img_feat_size, 16, 16
    Q = ques_feat_size

    key = jax.random.PRNGKey(0)
    k_img, k_txt, k_w, k_b = jax.random.split(key, 4)
    img_feat = jax.random.normal(k_img, (B, C, W, H), dtype=jnp.float32)
    text_feat = jax.random.normal(k_txt, (B, Q), dtype=jnp.float32)
    # Stacked Linear params stored as (nf, Q, fc_size) (x @ W + b convention),
    # equivalent to torch's (fc_size, Q) transposed.
    weights = jax.random.normal(k_w, (num_sent_fc, Q, fc_size), dtype=jnp.float32) * 0.1
    biases = jax.random.normal(k_b, (num_sent_fc, fc_size), dtype=jnp.float32) * 0.1

    out = convolved_attention(img_feat, text_feat, weights, biases)
    out = jax.block_until_ready(out)

    ref = _reference(img_feat, text_feat, weights, biases)
    assert out.shape == (num_sent_fc * B, B, W, H), out.shape
    assert jnp.allclose(out, ref, atol=1e-3, rtol=1e-3), "mismatch vs reference"

    print("KERNEL_OK")
</pallas_src>

<mosaic_0001>
module attributes {stable_mosaic.version = 11 : i64} {
  func.func @_conv_attn_kernel(%arg0: i32, %arg1: memref<2x32xf32, #tpu.memory_space<vmem>>, %arg2: memref<32x24xf32, #tpu.memory_space<vmem>>, %arg3: memref<1x24xf32, #tpu.memory_space<vmem>>, %arg4: memref<1x8x256xf32, #tpu.memory_space<vmem>>, %arg5: memref<3x1x2x256xf32, #tpu.memory_space<vmem>>) attributes {dimension_semantics = [#tpu.dimension_semantics<parallel>], iteration_bounds = array<i64: 2>, scalar_prefetch = 0 : i64, scratch_operands = 0 : i64, tpu.core_type = #tpu.core_type<tc>, window_params = [{pipeline_mode = #tpu.pipeline_mode<synchronous>, transform_indices = @transform_0, window_bounds = array<i64: 2, 32>}, {pipeline_mode = #tpu.pipeline_mode<synchronous>, transform_indices = @transform_1, window_bounds = array<i64: 32, 24>}, {pipeline_mode = #tpu.pipeline_mode<synchronous>, transform_indices = @transform_2, window_bounds = array<i64: 1, 24>}, {transform_indices = @transform_3, window_bounds = array<i64: 1, 8, 256>}, {transform_indices = @transform_4, window_bounds = array<i64: 3, 1, 2, 256>}]} {
    %c0 = arith.constant 0 : index
    %c0_0 = arith.constant 0 : index
    %0 = vector.load %arg1[%c0, %c0_0] : memref<2x32xf32, #tpu.memory_space<vmem>>, vector<2x32xf32>
    %c0_1 = arith.constant 0 : index
    %c0_2 = arith.constant 0 : index
    %1 = vector.load %arg2[%c0_1, %c0_2] : memref<32x24xf32, #tpu.memory_space<vmem>>, vector<32x24xf32>
    %cst = arith.constant dense<0.000000e+00> : vector<2x24xf32>
    %2 = tpu.matmul %0, %1, %cst {dimension_numbers = #tpu.dot_dimension_numbers<[1], [0], [0], [1], [0, 0, 1, 1], [], []>} : vector<2x32xf32>, vector<32x24xf32>, vector<2x24xf32> -> vector<2x24xf32>
    %c0_3 = arith.constant 0 : index
    %c0_4 = arith.constant 0 : index
    %3 = vector.load %arg3[%c0_3, %c0_4] : memref<1x24xf32, #tpu.memory_space<vmem>>, vector<1x24xf32>
    %4 = vector.broadcast %3 : vector<1x24xf32> to vector<2x24xf32>
    %5 = arith.addf %2, %4 : vector<2x24xf32>
    %6 = vector.extract_strided_slice %5 {offsets = [0, 0], sizes = [2, 8], strides = [1, 1]} : vector<2x24xf32> to vector<2x8xf32>
    %7 = vector.extract_strided_slice %5 {offsets = [0, 8], sizes = [2, 8], strides = [1, 1]} : vector<2x24xf32> to vector<2x8xf32>
    %8 = vector.extract_strided_slice %5 {offsets = [0, 16], sizes = [2, 8], strides = [1, 1]} : vector<2x24xf32> to vector<2x8xf32>
    %9 = tpu.concatenate %6, %7, %8 in 0 : vector<2x8xf32>, vector<2x8xf32>, vector<2x8xf32> -> vector<6x8xf32>
    %c0_5 = arith.constant 0 : index
    %c0_6 = arith.constant 0 : index
    %c0_7 = arith.constant 0 : index
    %10 = vector.load %arg4[%c0_5, %c0_6, %c0_7] : memref<1x8x256xf32, #tpu.memory_space<vmem>>, vector<1x8x256xf32>
    %11 = vector.shape_cast %10 : vector<1x8x256xf32> to vector<8x256xf32>
    %cst_8 = arith.constant dense<0.000000e+00> : vector<6x256xf32>
    %12 = tpu.matmul %9, %11, %cst_8 {dimension_numbers = #tpu.dot_dimension_numbers<[1], [0], [0], [1], [0, 0, 1, 1], [], []>} : vector<6x8xf32>, vector<8x256xf32>, vector<6x256xf32> -> vector<6x256xf32>
    %13 = vector.extract_strided_slice %12 {offsets = [0, 0], sizes = [2, 256], strides = [1, 1]} : vector<6x256xf32> to vector<2x256xf32>
    %c0_9 = arith.constant 0 : index
    %c0_10 = arith.constant 0 : index
    %c0_11 = arith.constant 0 : index
    %c0_12 = arith.constant 0 : index
    %14 = vector.load %arg5[%c0_9, %c0_10, %c0_11, %c0_12] : memref<3x1x2x256xf32, #tpu.memory_space<vmem>>, vector<1x1x2x256xf32>
    %15 = vector.shape_cast %14 : vector<1x1x2x256xf32> to vector<2x256xf32>
    %16 = vector.shape_cast %13 : vector<2x256xf32> to vector<1x1x2x256xf32>
    tpu.vector_store %arg5[%c0_9, %c0_10, %c0_11, %c0_12], %16 {strides = array<i32>} : memref<3x1x2x256xf32, #tpu.memory_space<vmem>>, vector<1x1x2x256xf32>,
    %17 = vector.extract_strided_slice %12 {offsets = [2, 0], sizes = [2, 256], strides = [1, 1]} : vector<6x256xf32> to vector<2x256xf32>
    %c1 = arith.constant 1 : index
    %c0_13 = arith.constant 0 : index
    %c0_14 = arith.constant 0 : index
    %c0_15 = arith.constant 0 : index
    %18 = vector.load %arg5[%c1, %c0_13, %c0_14, %c0_15] : memref<3x1x2x256xf32, #tpu.memory_space<vmem>>, vector<1x1x2x256xf32>
    %19 = vector.shape_cast %18 : vector<1x1x2x256xf32> to vector<2x256xf32>
    %20 = vector.shape_cast %17 : vector<2x256xf32> to vector<1x1x2x256xf32>
    tpu.vector_store %arg5[%c1, %c0_13, %c0_14, %c0_15], %20 {strides = array<i32>} : memref<3x1x2x256xf32, #tpu.memory_space<vmem>>, vector<1x1x2x256xf32>,
    %21 = vector.extract_strided_slice %12 {offsets = [4, 0], sizes = [2, 256], strides = [1, 1]} : vector<6x256xf32> to vector<2x256xf32>
    %c2 = arith.constant 2 : index
    %c0_16 = arith.constant 0 : index
    %c0_17 = arith.constant 0 : index
    %c0_18 = arith.constant 0 : index
    %22 = vector.load %arg5[%c2, %c0_16, %c0_17, %c0_18] : memref<3x1x2x256xf32, #tpu.memory_space<vmem>>, vector<1x1x2x256xf32>
    %23 = vector.shape_cast %22 : vector<1x1x2x256xf32> to vector<2x256xf32>
    %24 = vector.shape_cast %21 : vector<2x256xf32> to vector<1x1x2x256xf32>
    tpu.vector_store %arg5[%c2, %c0_16, %c0_17, %c0_18], %24 {strides = array<i32>} : memref<3x1x2x256xf32, #tpu.memory_space<vmem>>, vector<1x1x2x256xf32>,
    return
  }
  func.func @transform_0(%arg0: i32) -> (i32, i32) {
    %c0_i32 = arith.constant 0 : i32
    %c0_i32_0 = arith.constant 0 : i32
    %c0_i32_1 = arith.constant 0 : i32
    return %c0_i32, %c0_i32_0 : i32, i32
  }
  func.func @transform_1(%arg0: i32) -> (i32, i32) {
    %c0_i32 = arith.constant 0 : i32
    %c0_i32_0 = arith.constant 0 : i32
    %c0_i32_1 = arith.constant 0 : i32
    return %c0_i32, %c0_i32_0 : i32, i32
  }
  func.func @transform_2(%arg0: i32) -> (i32, i32) {
    %c0_i32 = arith.constant 0 : i32
    %c0_i32_0 = arith.constant 0 : i32
    %c0_i32_1 = arith.constant 0 : i32
    return %c0_i32, %c0_i32_0 : i32, i32
  }
  func.func @transform_3(%arg0: i32) -> (i32, i32, i32) {
    %c0_i32 = arith.constant 0 : i32
    %c0_i32_0 = arith.constant 0 : i32
    %c0_i32_1 = arith.constant 0 : i32
    return %arg0, %c0_i32, %c0_i32_0 : i32, i32, i32
  }
  func.func @transform_4(%arg0: i32) -> (i32, i32, i32, i32) {
    %c0_i32 = arith.constant 0 : i32
    %c0_i32_0 = arith.constant 0 : i32
    %c0_i32_1 = arith.constant 0 : i32
    %c0_i32_2 = arith.constant 0 : i32
    return %c0_i32, %arg0, %c0_i32_0, %c0_i32_1 : i32, i32, i32, i32
  }
}

</mosaic_0001>

<bundles_post_ra>
// kernel: tpu_custom_call.1
= control target key start
LH: loop header
LB: loop body
LE: loop exit
PB: predicated region body
PF: predicated region fallthrough
CT: control target
= control target key end

     0   :  { %9 = vsyncpa [#allocation3], 0  ;;  %s774_s0 = inlined_call_operand.vmem [shape: f32[2,32], index: 0, kind: input, shape index: {}]   ;;  %s775_s1 = inlined_call_operand.vmem [shape: f32[32,24], index: 1, kind: input, shape index: {}]   ;;  %s776_s2 = inlined_call_operand.vmem [shape: f32[1,24], index: 2, kind: input, shape index: {}]   ;;  %s777_s3 = inlined_call_operand.vmem [shape: f32[2,8,256], index: 3, kind: input, shape index: {}]   ;;  %s778_s4 = inlined_call_operand.hbm [shape: f32[3,2,2,256], index: 4, kind: output, shape index: {}]  }
   0x1   :  { %11 = vsyncpa [#allocation3 + $0x1], 0  ;;  %s654_s15 = smov 0   ;;  %s656_s16 = smov 0  }
   0x2   :  { %s658_s17 = smov 0   ;;  %s660_s18 = smov 0  }
   0x3 LB: > { %s675_s19 = sadd.s32 4294967295, %s618_s18   ;;  %s475_s20 = sadd.s32 4294967294, %s618_s18   ;;  %s618_s18 = sphi %s660_s18, %s784_s18   ;;  %s614_s17 = sphi %s658_s17, %s783_s17   ;;  %s610_s16 = sphi %s656_s16, %s782_s16   ;;  %s606_s15 = sphi %s654_s15, %s781_s15  }
   0x4   : > { %s679_s21 = sadd.s32 1, %s618_s18   ;;  %s113_s22 = sadd.s32 1, %s614_s17 }
   0x5   : > { %s110_s23 = ssub.s32 %s618_s18, %s679_s21  ;;  %p123_p0 = scmp.ne.s32.totalorder %s614_s17, %s610_s16 }
   0x6   : > { %p111_p1 = scmp.eq.s32.totalorder %s110_s23, 0  ;;  %p124_p2 = scmp.eq.s32.totalorder %s675_s19, 1 }
   0x7   : > { %p129_p3 = scmp.ne.s32.totalorder %s610_s16, %s606_s15  ;;  %p130_p4 = scmp.eq.s32.totalorder %s475_s20, 1 }
   0x8   : > { %s690_s24 = scalar_select %p111_p1, %s614_s17, %s113_s22  }
   0x9   : > { %p692_p5 = por %p124_p2, %p123_p0  ;;  %p696_p6 = por %p130_p4, %p129_p3 }
   0xa   : > { %p478_p7 = scmp.ge.s32.totalorder %s618_s18, 1  ;;  %p165_p8 = scmp.lt.s32.totalorder %s618_s18, 3 }
   0xc   : > { %p166_p9 = pnand %p478_p7, %p165_p8 }
   0xd   : > { %p191_p10 = scmp.lt.s32.totalorder (!%p166_p9), %s675_s19, 1  ;;  %s622_s27 = smov (!%p166_p9), 120  }
   0xe   : > { %169 = sbr.rel (%p166_p9) target bundleno = 561 (0x231), region = 36  ;;  %s623_s28 = smov (!%p166_p9), 112  }
   0xf   : > { %s188_s29 = sand.u32 (!%p166_p9), 1, %s610_s16   ;;  %s493_s7 = sshll.u32 (!%p166_p9), %s675_s19, 6 }
  0x10   : > { %s510_s30 = smul.u32 (!%p166_p9), 12, %s188_s29  ;;  %s732_s10 = scalar_lea.hbm (!%p166_p9), %s778_s4, %s493_s7 }
  0x12   : > { %s190_s5 = scalar_lea.vmem (!%p166_p9), [#allocation2], %s510_s30 }
  0x13   : > { %v200_v0 = vld [vmem:[%s775_s1 + $0x18] sm:$0xff]  ;;  %v620_v1 = vmov 0.0   ;;  %v199_v2 = vld [vmem:[%s775_s1 + $0x10] sm:$0xff]  ;;  %vm621_vm0 = vmmov 0   ;;  %v198_v3 = vld [vmem:[%s775_s1 + $0x8] sm:$0xff]  ;;  %vm208_vm1 = vcmask 261120   ;;  %v378_v20 = vlaneseq }
  0x14   : > { %499 = vmatprep.subr.mxu0 %v620_v1  ;;  %507 = vmatprep.mubr.msk.f32.mxu0 %vm621_vm0, %v620_v1  ;;  %v197_v4 = vld [vmem:[%s775_s1] sm:$0xff]  ;;  %s192_s11 = scalar_select %p191_p10, %s675_s19, 1  ;;  %vm291_vm2 = vcmask 1041408   ;;  %vm293_vm3 = vcmask 1043456   ;;  %vm297_vm4 = vcmask 64512  }
  0x15   : > { %500 = vmatpush3.msra.mxu0 %v200_v0  ;;  %365 = vmatprep.mubr.f32.mxu1 %v620_v1  ;;  %v196_v5 = vld [vmem:[%s774_s0] sm:$0x3]  ;;  %v624_v18 = vmov 1983009808   ;;  %v379_v22 = vshrl.u32 %v378_v20, 7  ;;  %s413_s6 = sshll.u32 %s190_s5, 4  ;;  %s727_s6 = int_to_ptr.vmem [resolvable:$true] %s413_s6 }
  0x16   : > { %501 = vmatprep.subr.mxu0 %v620_v1  ;;  %s491_s12 = sshll.u32 %s192_s11, 4  ;;  %v481_v8 = vld [vmem:[%s776_s2] ss:$0 sm:$0xff]  ;;  %v376_v19 = vunpack.c.l.s4 %v624_v18  ;;  %s734_s11 = scalar_lea.sflag [#allocation3], %s188_s29 }
  0x17   : > { %502 = vmatpush3.msra.mxu0 %v199_v2  ;;  %s195_s20 = scalar_lea.vmem %s777_s3, %s491_s12  ;;  %s558_s12 = scalar_lea.vmem %s727_s6, 192 }
  0x18   : > { %503 = vmatprep.subr.mxu0 %v620_v1  ;;  %v296_v6 = vld [vmem:[%s195_s20 + $0x8] sm:$0xff]  ;;  %v295_v7 = vld [vmem:[%s195_s20] sm:$0xff]  ;;  %v377_v21 = vunpack.c.0.s8 %v376_v19  ;;  %p559_p11 = scmp.ne.s32.totalorder %s727_s6, %s558_s12  ;;  %s625_s19 = smov [#allocation2]  }
  0x19   : > { %504 = vmatpush3.msra.mxu0 %v198_v3  ;;  %331 = vmatprep.subr.mxu1 %v296_v6  ;;  %s562_s13 = sshll.u32 %s625_s19, 4  ;;  %s563_s13 = int_to_ptr.vmem [resolvable:$false] %s562_s13 }
  0x1a   : > { %505 = vmatprep.subr.mxu0 %v620_v1  ;;  %332 = vmatpush1.msra.mxu1 %v295_v7  ;;  %v380_v24 = vsub.s32 %v377_v21, %v379_v22  ;;  %p560_p12 = pnand %p559_p11, %p692_p5  ;;  %s564_s14 = scalar_lea.vmem %s563_s13, 384 }
  0x1b   : > { %506 = vmatpush3.msra.mxu0 %v197_v4  ;;  %p565_p0 = scmp.lt.s32.totalorder %s727_s6, %s563_s13  ;;  %p566_p1 = scmp.lt.s32.totalorder %s564_s14, %s558_s12 }
  0x1c   : > { %508 = vmatmul.mubr.msk.f32.vlgmr.msra.gmra.mxu0 %vm208_vm1, %v196_v5  ;;  %p561_p13 = pneg %p560_p12 }
  0x1d   : > { %p567_p2 = por %p566_p1, %p565_p0 }
  0x1f   : > { %p568_p3 = pnand %p567_p2, %p561_p13 }
  0xdc   : > { %v278_v9 = vpop.f32.mrf.mxu0 }
  0xdd   : > { %v279_v10 = vadd.f32 %v481_v8, %v278_v9 }
  0xde   : > { %v509_v11 = vpop.f32.mrf.mxu0 }
  0xdf   : > { %v283_v12 = vrot.slane %v279_v10, 6  ;;  %v287_v13 = vrot.slane %v279_v10, 4 }
  0xe1   : > { %284 = vrot.lane.b32.xlu0 %v283_v12, %s622_s27 }
  0xe5   : > { %288 = vrot.lane.b32.xlu0 %v287_v13, %s623_s28 }
 0x153   : > { %v285_v14 = vpop.permute.xlu0 %284 }
 0x154   : > { %v292_v15 = vsel %vm291_vm2, %v279_v10, %v285_v14 }
 0x157   : > { %v289_v16 = vpop.permute.xlu0 %288 }
 0x158   : > { %v294_v17 = vsel %vm293_vm3, %v292_v15, %v289_v16 }
 0x159   : > { %483 = vmatmul.mubr.msk.f32.vlgmr.msra.gmra.mxu1 %vm297_vm4, %v294_v17 }
 0x219   : > { %v367_v23 = vpop.f32.mrf.mxu1 }
 0x21b   : > { %v369_v25 = vpop.f32.mrf.mxu1 }
 0x21c   : > { %v374_v26 = vcombine.low %v367_v23, %v369_v25  ;;  %v388_v27 = vcombine.high %v367_v23, %v369_v25 }
 0x21e   : > { %v381_v28 = vrot.slane %v374_v26, %v380_v24  ;;  %484 = vst.sshfl [vmem:[%s190_s5] sm:$0x33 pattern:$0x76325410] %v374_v26 }
 0x21f   : > { %492 = vst.sshfl [vmem:[%s190_s5 + $0x8] sm:$0x33 pattern:$0x76325410] %v388_v27 }
 0x220   : > { %v384_v29 = vcombine.high %v381_v28, %v381_v28 }
 0x222   : > { %485 = vst [vmem:[%s190_s5 + $0x4] sm:$0xf] %v384_v29 }
 0x223   : > { %571 = shalt.err (!%p568_p3)
}
 0x224   : > { %s572_s20 = scalar_lea.hbm %s732_s10, 192  ;;  %s576_s27 = scalar_lea.hbm %s778_s4, 384 }
 0x225   : > { %p573_p4 = scmp.ne.s32.totalorder %s732_s10, %s572_s20  ;;  %p577_p9 = scmp.lt.s32.totalorder %s732_s10, %s778_s4 }
 0x226   : > { %p578_p10 = scmp.lt.s32.totalorder %s576_s27, %s572_s20 }
 0x227   : > { %p574_p7 = pnand %p573_p4, %p692_p5 }
 0x228   : > { %p579_p11 = por %p578_p10, %p577_p9 }
 0x229   : > { %p575_p8 = pneg %p574_p7 }
 0x22b   : > { %p580_p12 = pnand %p579_p11, %p575_p8 }
 0x22d   : > { %583 = shalt.err (!%p580_p12)
}
 0x22e   : > { %s626_s30 = smov 64   ;;  %s627_s5 = smov 128  }
 0x22f   : > { %s628_s7 = smov 4  }
 0x230   : > { %511 = dma.vmem_to_hbm [thread:$0]  (%p692_p5), %s727_s6, 192, %s732_s10, %s734_s11, %s626_s30, %s627_s5, %s628_s7  }
 0x231 PF: > { %p517_p13 = scmp.ge.s32.totalorder %s618_s18, 2  ;;  %s428_s8 = sand.u32 1, %s606_s15  }
 0x232   : > { %s429_s9 = scalar_lea.sflag [#allocation3], %s428_s8 }
 0x233   : > { %p514_p0 = pnand %p517_p13, %p696_p6 }
 0x235   : > { %p515_p1 = pneg %p514_p0 }
 0x237   : > { %601 = dma.done.wait (%p515_p1), %s429_s9, 192  }
 0x238   : > { %603 = vsyncadd (%p515_p1), %s429_s9, 4294967104  ;;  %p14_p2 = scmp.ge.s32.totalorder %s679_s21, 4   ;;  %s781_s15 = smov %s610_s16 }
 0x239   : > { %s782_s16 = smov %s614_s17  ;;  %s783_s17 = smov %s690_s24 }
 0x23a   : > { %s784_s18 = smov %s679_s21  ;;  %16 = sbr.rel (!%p14_p2) target bundleno = 3 (0x3), region = 73 }
 0x23f   :  { %434 = vsyncpa [#allocation3], 1 }
 0x240   :  { %436 = vsyncpa [#allocation3 + $0x1], 1 }

</bundles_post_ra>
